<compile_context>
chip_gen: v6e
topology: v6e:2x2x1
jax: 0.10.0
libtpu: 0.0.40
codegen_flags: <defaults>
</compile_context>

<pallas_src>
import functools

import jax
import jax.numpy as jnp
from jax.experimental import pallas as pl
from jax.experimental.pallas import tpu as pltpu


def _round_up(x, m):
    return ((x + m - 1) // m) * m


def _cdiv(a, b):
    return -(-a // b)


def _default_nsplit():
    """2-way batch split only on chips with 2 TensorCores per device."""
    try:
        kind = jax.devices()[0].device_kind.lower()
    except Exception:
        return 1
    for tag in ("v4", "v5p", "v7", "7x"):
        if tag in kind:
            return 2
    return 1


def _multilabel_softmax_loss_kernel(x_ref, lbl_ref, w_ref,
                                    numer_out_ref, denom_out_ref,
                                    numer_acc, denom_acc, *, batch):
    s = pl.program_id(0)                      # parallel split (TensorCore shard)
    i = pl.program_id(1)                      # B-block index (reduction axis)
    nb = pl.num_programs(1)

    @pl.when(i == 0)
    def _init():
        numer_acc[...] = jnp.zeros_like(numer_acc)
        denom_acc[...] = jnp.zeros_like(denom_acc)

    x0 = x_ref[0].astype(jnp.float32)         # (T, blk) class-0 logits, B on lanes
    x1 = x_ref[1].astype(jnp.float32)         # (T, blk) class-1 logits
    lbl = lbl_ref[...].astype(jnp.int32)      # (T, blk)
    blk = x0.shape[-1]

    # Ragged-B handling: lanes with global batch index >= batch hold OOB garbage
    # (inputs are NOT padded). Mask with jnp.where on the contribution so NaN/inf
    # garbage cannot propagate (0 * NaN would still be NaN).
    base = (s * nb + i) * blk
    lane = jax.lax.broadcasted_iota(jnp.int32, x0.shape, 1)
    valid = (base + lane) < batch

    sel0 = valid & (lbl == 0)
    sel1 = valid & (lbl == 1)                 # labels outside {0,1} get weight 0
    labeled = sel0 | sel1

    # C=2 specialized, max-stabilized logsumexp: one exp + one log1p (EUP).
    m = jnp.maximum(x0, x1)
    lse = m + jnp.log1p(jnp.exp(-jnp.abs(x0 - x1)))
    picked_x = jnp.where(sel0, x0, x1)
    nll = jnp.where(labeled, lse - picked_x, 0.0)   # -log_softmax(x)[label]

    w = w_ref[...].astype(jnp.float32)        # (T, 2) per-task class weights
    # (T, 1) columns broadcast implicitly inside where (no explicit broadcast_to).
    picked_w = jnp.where(sel0, w[:, 0:1], jnp.where(sel1, w[:, 1:2], 0.0))

    numer_acc[...] += picked_w * nll
    denom_acc[...] += picked_w

    @pl.when(i == nb - 1)
    def _finalize():
        t = numer_acc.shape[0]
        n = jnp.sum(numer_acc[...], axis=1, keepdims=True)   # (T, 1)
        d = jnp.sum(denom_acc[...], axis=1, keepdims=True)   # (T, 1)
        numer_out_ref[...] = jnp.broadcast_to(n, (t, 128))[None]
        denom_out_ref[...] = jnp.broadcast_to(d, (t, 128))[None]


def multilabel_softmax_loss(outputs, labels, class_weights, *,
                            block_b=32768, nsplit=None):
    """outputs: (B, T, 2) float (f32/bf16), labels: (B, T) int, class_weights: (T, 2)."""
    B, T, C = outputs.shape
    # TODO(synk): general C > 2 would need a gather-based NLL; the module's
    # CrossEntropyLoss(weight=[1, ratio]) implies exactly 2 classes.
    assert C == 2, "kernel is specialized for 2-class tasks"
    assert class_weights.shape == (T, C)

    if nsplit is None:
        nsplit = _default_nsplit()
    # Keep every split's first block at least partially in-bounds.
    nsplit = int(max(1, min(nsplit, _cdiv(B, 128))))

    # Per-split B-block: multiple of 128 lanes, large enough to amortize the
    # ~0.35us fixed per-grid-step overhead against multi-MB DMA tiles.
    blk = _round_up(min(block_b, _round_up(_cdiv(B, nsplit), 128)), 128)
    nb = _cdiv(B, nsplit * blk)               # B blocks per split
    last_blk = (B - 1) // blk                 # last lane-block holding valid data

    # Lane-dense layout: B on lanes, T on sublanes, C outermost. No padding.
    # TODO(synk): if the producer can emit (C, T, B) logits / (T, B) labels
    # directly, drop this transpose -- it is an extra full HBM pass.
    x_t = jnp.transpose(outputs, (2, 1, 0))               # (C, T, B)
    lbl_t = labels.T.astype(jnp.int8)                     # (T, B): 4x less label DMA
    w = class_weights.astype(jnp.float32)

    # Clamp the block index so no DMA block starts entirely past the array end;
    # the in-kernel mask (computed from program ids, not the clamped index)
    # already zeroes such a block's contribution.
    x_map = lambda s, i: (0, 0, jnp.minimum(s * nb + i, last_blk))
    lbl_map = lambda s, i: (0, jnp.minimum(s * nb + i, last_blk))

    x_bytes = outputs.dtype.itemsize
    est = (2 * C * T * blk * x_bytes      # double-buffered logits tiles
           + 2 * T * blk * 4              # label tiles (conservative footprint)
           + 2 * T * blk * 4)             # f32 accumulators
    vmem_limit = int(min(48 * 1024 * 1024,
                         max(32 * 1024 * 1024, 2 * est + (8 << 20))))

    kernel = functools.partial(_multilabel_softmax_loss_kernel, batch=B)

    numer_part, denom_part = pl.pallas_call(
        kernel,
        out_shape=(jax.ShapeDtypeStruct((nsplit, T, 128), jnp.float32),
                   jax.ShapeDtypeStruct((nsplit, T, 128), jnp.float32)),
        grid=(nsplit, nb),
        in_specs=[
            pl.BlockSpec((C, T, blk), x_map),
            pl.BlockSpec((T, blk), lbl_map),
            pl.BlockSpec((T, C), lambda s, i: (0, 0)),
        ],
        out_specs=(
            pl.BlockSpec((1, T, 128), lambda s, i: (s, 0, 0)),
            pl.BlockSpec((1, T, 128), lambda s, i: (s, 0, 0)),
        ),
        scratch_shapes=[
            pltpu.VMEM((T, blk), jnp.float32),   # per-task numerator partials
            pltpu.VMEM((T, blk), jnp.float32),   # per-task denominator partials
        ],
        compiler_params=pltpu.CompilerParams(
            dimension_semantics=("parallel", "arbitrary"),
            vmem_limit_bytes=vmem_limit,
        ),
        # TODO(synk): if a bundle profile shows VMEM ld/st (spill) saturation at
        # blk >= 32k, strip-mine the elementwise math over ~2k-lane sub-chunks
        # (lax.fori_loop(unroll=True)) while keeping the single big DMA tile.
    )(x_t, lbl_t, w)

    # Weighted mean per task = sum(numer partials) / sum(denom partials); sum tasks.
    # (A task whose total selected weight is 0 yields NaN, matching PyTorch's
    # weighted-mean CrossEntropyLoss behavior.)
    numer = jnp.sum(numer_part[:, :, 0], axis=0)           # (T,)
    denom = jnp.sum(denom_part[:, :, 0], axis=0)           # (T,)
    return jnp.sum(numer / denom)


def _reference_loss(outputs, labels, class_weights):
    """Pure-JAX reference mirroring the PyTorch module (for correctness check)."""
    x = outputs.astype(jnp.float32)
    logp = jax.nn.log_softmax(x, axis=-1)                          # (B, T, C)
    onehot = jax.nn.one_hot(labels, x.shape[-1], dtype=jnp.float32)
    picked_logp = jnp.sum(onehot * logp, axis=-1)                  # (B, T)
    picked_w = jnp.sum(onehot * class_weights[None].astype(jnp.float32), axis=-1)
    per_task = jnp.sum(-picked_logp * picked_w, axis=0) / jnp.sum(picked_w, axis=0)
    return jnp.sum(per_task)


if __name__ == "__main__":
    # Synthetic config: output_dim (task_num) = 8 binary tasks. Tasks 0..3 have a
    # configured loss_weight ratio; tasks 4..7 fall back to unweighted CE ([1, 1]).
    B, T, C = 383, 8, 2      # B not a multiple of 128 -> exercises ragged masking
    ratios = {0: 2.0, 1: 0.5, 2: 3.0, 3: 1.5}
    class_weights = jnp.asarray([[1.0, ratios.get(t, 1.0)] for t in range(T)],
                                dtype=jnp.float32)

    key = jax.random.PRNGKey(0)
    k1, k2 = jax.random.split(key)
    outputs = jax.random.normal(k1, (B, T, C), dtype=jnp.float32)
    labels = jax.random.randint(k2, (B, T), 0, C, dtype=jnp.int32)

    ref = _reference_loss(outputs, labels, class_weights)

    # Single-block path (typical: whole batch fits one big lane tile).
    loss = multilabel_softmax_loss(outputs, labels, class_weights)
    jax.block_until_ready(loss)
    assert jnp.allclose(loss, ref, rtol=1e-4, atol=1e-5), (loss, ref)

    # Multi-step accumulation path (small blocks -> several grid steps per split).
    loss_small = multilabel_softmax_loss(outputs, labels, class_weights, block_b=128)
    jax.block_until_ready(loss_small)
    assert jnp.allclose(loss_small, ref, rtol=1e-4, atol=1e-5), (loss_small, ref)

    # bf16 logits path (kernel upcasts to f32; compare vs reference on same bf16 data).
    outputs_bf16 = outputs.astype(jnp.bfloat16)
    loss_bf16 = multilabel_softmax_loss(outputs_bf16, labels, class_weights)
    jax.block_until_ready(loss_bf16)
    ref_bf16 = _reference_loss(outputs_bf16, labels, class_weights)
    assert jnp.allclose(loss_bf16, ref_bf16, rtol=1e-4, atol=1e-5), (loss_bf16, ref_bf16)

    print("KERNEL_OK")
</pallas_src>

<mosaic_0001>
module attributes {stable_mosaic.version = 11 : i64} {
  func.func @_multilabel_softmax_loss_kernel(%arg0: i32, %arg1: i32, %arg2: memref<2x8x384xf32, #tpu.memory_space<vmem>>, %arg3: memref<8x384xi8, #tpu.memory_space<vmem>>, %arg4: memref<8x2xf32, #tpu.memory_space<vmem>>, %arg5: memref<1x8x128xf32, #tpu.memory_space<vmem>>, %arg6: memref<1x8x128xf32, #tpu.memory_space<vmem>>, %arg7: memref<8x384xf32, #tpu.memory_space<vmem>>, %arg8: memref<8x384xf32, #tpu.memory_space<vmem>>) attributes {dimension_semantics = [#tpu.dimension_semantics<parallel>, #tpu.dimension_semantics<arbitrary>], iteration_bounds = array<i64: 1, 1>, scalar_prefetch = 0 : i64, scratch_operands = 2 : i64, tpu.core_type = #tpu.core_type<tc>, window_params = [{transform_indices = @transform_0, window_bounds = array<i64: 2, 8, 384>}, {transform_indices = @transform_1, window_bounds = array<i64: 8, 384>}, {pipeline_mode = #tpu.pipeline_mode<synchronous>, transform_indices = @transform_2, window_bounds = array<i64: 8, 2>}, {transform_indices = @transform_3, window_bounds = array<i64: 1, 8, 128>}, {transform_indices = @transform_4, window_bounds = array<i64: 1, 8, 128>}]} {
    %c0_i32 = arith.constant 0 : i32
    %0 = arith.cmpi eq, %arg1, %c0_i32 : i32
    %1 = arith.extui %0 : i1 to i32
    %c0_i32_0 = arith.constant 0 : i32
    %2 = arith.cmpi ne, %1, %c0_i32_0 : i32
    scf.if %2 {
      %cst_23 = arith.constant 0.000000e+00 : f32
      %56 = vector.broadcast %cst_23 : f32 to vector<8x384xf32>
      %c0_24 = arith.constant 0 : index
      %c0_25 = arith.constant 0 : index
      %57 = vector.load %arg7[%c0_24, %c0_25] : memref<8x384xf32, #tpu.memory_space<vmem>>, vector<8x384xf32>
      tpu.vector_store %arg7[%c0_24, %c0_25], %56 {strides = array<i32>} : memref<8x384xf32, #tpu.memory_space<vmem>>, vector<8x384xf32>,
      %cst_26 = arith.constant 0.000000e+00 : f32
      %58 = vector.broadcast %cst_26 : f32 to vector<8x384xf32>
      %c0_27 = arith.constant 0 : index
      %c0_28 = arith.constant 0 : index
      %59 = vector.load %arg8[%c0_27, %c0_28] : memref<8x384xf32, #tpu.memory_space<vmem>>, vector<8x384xf32>
      tpu.vector_store %arg8[%c0_27, %c0_28], %58 {strides = array<i32>} : memref<8x384xf32, #tpu.memory_space<vmem>>, vector<8x384xf32>,
    } else {
    }
    %c0 = arith.constant 0 : index
    %c0_1 = arith.constant 0 : index
    %c0_2 = arith.constant 0 : index
    %3 = vector.load %arg2[%c0, %c0_1, %c0_2] : memref<2x8x384xf32, #tpu.memory_space<vmem>>, vector<1x8x384xf32>
    %4 = vector.shape_cast %3 : vector<1x8x384xf32> to vector<8x384xf32>
    %c1 = arith.constant 1 : index
    %c0_3 = arith.constant 0 : index
    %c0_4 = arith.constant 0 : index
    %5 = vector.load %arg2[%c1, %c0_3, %c0_4] : memref<2x8x384xf32, #tpu.memory_space<vmem>>, vector<1x8x384xf32>
    %6 = vector.shape_cast %5 : vector<1x8x384xf32> to vector<8x384xf32>
    %c0_5 = arith.constant 0 : index
    %c0_6 = arith.constant 0 : index
    %7 = vector.load %arg3[%c0_5, %c0_6] : memref<8x384xi8, #tpu.memory_space<vmem>>, vector<8x384xi8>
    %8 = arith.extsi %7 : vector<8x384xi8> to vector<8x384xi32>
    %c1_i32 = arith.constant 1 : i32
    %9 = arith.muli %arg0, %c1_i32 : i32
    %10 = arith.addi %9, %arg1 : i32
    %c384_i32 = arith.constant 384 : i32
    %11 = arith.muli %10, %c384_i32 : i32
    %12 = tpu.iota {dimensions = array<i32: 1>} : vector<8x384xi32>
    %13 = vector.broadcast %11 : i32 to vector<8x384xi32>
    %14 = arith.addi %13, %12 : vector<8x384xi32>
    %c383_i32 = arith.constant 383 : i32
    %15 = vector.broadcast %c383_i32 : i32 to vector<8x384xi32>
    %16 = arith.cmpi slt, %14, %15 : vector<8x384xi32>
    %c0_i32_7 = arith.constant 0 : i32
    %17 = vector.broadcast %c0_i32_7 : i32 to vector<8x384xi32>
    %18 = arith.cmpi eq, %8, %17 : vector<8x384xi32>
    %19 = arith.andi %16, %18 : vector<8x384xi1>
    %c1_i32_8 = arith.constant 1 : i32
    %20 = vector.broadcast %c1_i32_8 : i32 to vector<8x384xi32>
    %21 = arith.cmpi eq, %8, %20 : vector<8x384xi32>
    %22 = arith.andi %16, %21 : vector<8x384xi1>
    %23 = arith.ori %19, %22 : vector<8x384xi1>
    %24 = arith.maximumf %4, %6 : vector<8x384xf32>
    %25 = arith.subf %4, %6 : vector<8x384xf32>
    %26 = math.absf %25 : vector<8x384xf32>
    %cst = arith.constant 0.000000e+00 : f32
    %27 = vector.broadcast %cst : f32 to vector<8x384xf32>
    %28 = arith.subf %27, %26 : vector<8x384xf32>
    %29 = math.exp %28 : vector<8x384xf32>
    %30 = math.log1p %29 : vector<8x384xf32>
    %31 = arith.addf %24, %30 : vector<8x384xf32>
    %32 = arith.select %19, %4, %6 : vector<8x384xi1>, vector<8x384xf32>
    %33 = arith.subf %31, %32 : vector<8x384xf32>
    %cst_9 = arith.constant 0.000000e+00 : f32
    %34 = vector.broadcast %cst_9 : f32 to vector<8x384xf32>
    %35 = arith.select %23, %33, %34 : vector<8x384xi1>, vector<8x384xf32>
    %c0_10 = arith.constant 0 : index
    %c0_11 = arith.constant 0 : index
    %36 = vector.load %arg4[%c0_10, %c0_11] : memref<8x2xf32, #tpu.memory_space<vmem>>, vector<8x2xf32>
    %37 = vector.extract_strided_slice %36 {offsets = [0, 0], sizes = [8, 1], strides = [1, 1]} : vector<8x2xf32> to vector<8x1xf32>
    %38 = vector.extract_strided_slice %36 {offsets = [0, 1], sizes = [8, 1], strides = [1, 1]} : vector<8x2xf32> to vector<8x1xf32>
    %cst_12 = arith.constant 0.000000e+00 : f32
    %39 = vector.shape_cast %38 : vector<8x1xf32> to vector<8x1xf32>
    %40 = vector.broadcast %39 : vector<8x1xf32> to vector<8x384xf32>
    %41 = vector.broadcast %cst_12 : f32 to vector<8x384xf32>
    %42 = arith.select %22, %40, %41 : vector<8x384xi1>, vector<8x384xf32>
    %43 = vector.shape_cast %37 : vector<8x1xf32> to vector<8x1xf32>
    %44 = vector.broadcast %43 : vector<8x1xf32> to vector<8x384xf32>
    %45 = arith.select %19, %44, %42 : vector<8x384xi1>, vector<8x384xf32>
    %c0_13 = arith.constant 0 : index
    %c0_14 = arith.constant 0 : index
    %46 = vector.load %arg7[%c0_13, %c0_14] : memref<8x384xf32, #tpu.memory_space<vmem>>, vector<8x384xf32>
    %47 = arith.mulf %45, %35 : vector<8x384xf32>
    %48 = arith.addf %46, %47 : vector<8x384xf32>
    %c0_15 = arith.constant 0 : index
    %c0_16 = arith.constant 0 : index
    %49 = vector.load %arg7[%c0_15, %c0_16] : memref<8x384xf32, #tpu.memory_space<vmem>>, vector<8x384xf32>
    tpu.vector_store %arg7[%c0_15, %c0_16], %48 {strides = array<i32>} : memref<8x384xf32, #tpu.memory_space<vmem>>, vector<8x384xf32>,
    %c0_17 = arith.constant 0 : index
    %c0_18 = arith.constant 0 : index
    %50 = vector.load %arg8[%c0_17, %c0_18] : memref<8x384xf32, #tpu.memory_space<vmem>>, vector<8x384xf32>
    %51 = arith.addf %50, %45 : vector<8x384xf32>
    %c0_19 = arith.constant 0 : index
    %c0_20 = arith.constant 0 : index
    %52 = vector.load %arg8[%c0_19, %c0_20] : memref<8x384xf32, #tpu.memory_space<vmem>>, vector<8x384xf32>
    tpu.vector_store %arg8[%c0_19, %c0_20], %51 {strides = array<i32>} : memref<8x384xf32, #tpu.memory_space<vmem>>, vector<8x384xf32>,
    %c0_i32_21 = arith.constant 0 : i32
    %53 = arith.cmpi eq, %arg1, %c0_i32_21 : i32
    %54 = arith.extui %53 : i1 to i32
    %c0_i32_22 = arith.constant 0 : i32
    %55 = arith.cmpi ne, %54, %c0_i32_22 : i32
    scf.if %55 {
      %c0_23 = arith.constant 0 : index
      %c0_24 = arith.constant 0 : index
      %56 = vector.load %arg7[%c0_23, %c0_24] : memref<8x384xf32, #tpu.memory_space<vmem>>, vector<8x384xf32>
      %cst_25 = arith.constant dense<0.000000e+00> : vector<8xf32>
      %57 = vector.multi_reduction <add>, %56, %cst_25 [1] : vector<8x384xf32> to vector<8xf32>
      %58 = vector.shape_cast %57 : vector<8xf32> to vector<8x1xf32>
      %c0_26 = arith.constant 0 : index
      %c0_27 = arith.constant 0 : index
      %59 = vector.load %arg8[%c0_26, %c0_27] : memref<8x384xf32, #tpu.memory_space<vmem>>, vector<8x384xf32>
      %cst_28 = arith.constant dense<0.000000e+00> : vector<8xf32>
      %60 = vector.multi_reduction <add>, %59, %cst_28 [1] : vector<8x384xf32> to vector<8xf32>
      %61 = vector.shape_cast %60 : vector<8xf32> to vector<8x1xf32>
      %62 = vector.shape_cast %58 : vector<8x1xf32> to vector<8x1xf32>
      %63 = vector.broadcast %62 : vector<8x1xf32> to vector<8x128xf32>
      %64 = vector.shape_cast %63 : vector<8x128xf32> to vector<1x8x128xf32>
      %c0_29 = arith.constant 0 : index
      %c0_30 = arith.constant 0 : index
      %c0_31 = arith.constant 0 : index
      %65 = vector.load %arg5[%c0_29, %c0_30, %c0_31] : memref<1x8x128xf32, #tpu.memory_space<vmem>>, vector<1x8x128xf32>
      tpu.vector_store %arg5[%c0_29, %c0_30, %c0_31], %64 {strides = array<i32>} : memref<1x8x128xf32, #tpu.memory_space<vmem>>, vector<1x8x128xf32>,
      %66 = vector.shape_cast %61 : vector<8x1xf32> to vector<8x1xf32>
      %67 = vector.broadcast %66 : vector<8x1xf32> to vector<8x128xf32>
      %68 = vector.shape_cast %67 : vector<8x128xf32> to vector<1x8x128xf32>
      %c0_32 = arith.constant 0 : index
      %c0_33 = arith.constant 0 : index
      %c0_34 = arith.constant 0 : index
      %69 = vector.load %arg6[%c0_32, %c0_33, %c0_34] : memref<1x8x128xf32, #tpu.memory_space<vmem>>, vector<1x8x128xf32>
      tpu.vector_store %arg6[%c0_32, %c0_33, %c0_34], %68 {strides = array<i32>} : memref<1x8x128xf32, #tpu.memory_space<vmem>>, vector<1x8x128xf32>,
    } else {
    }
    return
  }
  func.func @transform_0(%arg0: i32, %arg1: i32) -> (i32, i32, i32) {
    %c1_i32 = arith.constant 1 : i32
    %0 = arith.muli %arg0, %c1_i32 : i32
    %1 = arith.addi %0, %arg1 : i32
    %c0_i32 = arith.constant 0 : i32
    %2 = arith.minsi %1, %c0_i32 : i32
    %c0_i32_0 = arith.constant 0 : i32
    %c0_i32_1 = arith.constant 0 : i32
    %c0_i32_2 = arith.constant 0 : i32
    return %c0_i32_0, %c0_i32_1, %2 : i32, i32, i32
  }
  func.func @transform_1(%arg0: i32, %arg1: i32) -> (i32, i32) {
    %c1_i32 = arith.constant 1 : i32
    %0 = arith.muli %arg0, %c1_i32 : i32
    %1 = arith.addi %0, %arg1 : i32
    %c0_i32 = arith.constant 0 : i32
    %2 = arith.minsi %1, %c0_i32 : i32
    %c0_i32_0 = arith.constant 0 : i32
    %c0_i32_1 = arith.constant 0 : i32
    return %c0_i32_0, %2 : i32, i32
  }
  func.func @transform_2(%arg0: i32, %arg1: i32) -> (i32, i32) {
    %c0_i32 = arith.constant 0 : i32
    %c0_i32_0 = arith.constant 0 : i32
    %c0_i32_1 = arith.constant 0 : i32
    return %c0_i32, %c0_i32_0 : i32, i32
  }
  func.func @transform_3(%arg0: i32, %arg1: i32) -> (i32, i32, i32) {
    %c0_i32 = arith.constant 0 : i32
    %c0_i32_0 = arith.constant 0 : i32
    %c0_i32_1 = arith.constant 0 : i32
    return %arg0, %c0_i32, %c0_i32_0 : i32, i32, i32
  }
  func.func @transform_4(%arg0: i32, %arg1: i32) -> (i32, i32, i32) {
    %c0_i32 = arith.constant 0 : i32
    %c0_i32_0 = arith.constant 0 : i32
    %c0_i32_1 = arith.constant 0 : i32
    return %arg0, %c0_i32, %c0_i32_0 : i32, i32, i32
  }
}

</mosaic_0001>

<bundles_post_ra>
// kernel: tpu_custom_call.1
= control target key start
LH: loop header
LB: loop body
LE: loop exit
PB: predicated region body
PF: predicated region fallthrough
CT: control target
= control target key end

     0   :  { %10 = vsyncpa [#allocation5], 0  ;;  %s497_s0 = inlined_call_operand.hbm [shape: f32[2,8,383], index: 0, kind: input, shape index: {}]   ;;  %s498_s1 = inlined_call_operand.vmem [shape: s8[8,383], index: 1, kind: input, shape index: {}]   ;;  %s499_s2 = inlined_call_operand.vmem [shape: f32[8,2], index: 2, kind: input, shape index: {}]   ;;  %s500_s3 = inlined_call_operand.hbm [shape: f32[1,8,128], index: 3, kind: output, shape index: {0}]   ;;  %s501_s4 = inlined_call_operand.hbm [shape: f32[1,8,128], index: 4, kind: output, shape index: {1}]  }
   0x1   :  { %11 = vsyncpa [#allocation6], 0 }
   0x2   :  { %12 = vsyncpa [#allocation9], 0  ;;  %s360_s15 = smov [#allocation4]  }
   0x3   :  { %s24_s16 = sshll.u32 %s360_s15, 4  ;;  %s25_s16 = int_to_ptr.vmem [resolvable:$true] %s24_s16 }
   0x4   :  { %s302_s17 = scalar_lea.vmem %s25_s16, 768  ;;  %p307_p1 = scmp.lt.s32.totalorder %s25_s16, %s25_s16 }
   0x5   :  { %p303_p0 = scmp.ne.s32.totalorder %s25_s16, %s302_s17  ;;  %p308_p2 = scmp.lt.s32.totalorder %s302_s17, %s302_s17 }
   0x7   :  { %p309_p3 = por %p308_p2, %p307_p1 }
   0x9   :  { %p310_p4 = pnand %p309_p3, %p303_p0 }
   0xb   :  { %313 = shalt.err (!%p310_p4)
}
   0xc   :  { %s361_s18 = smov 384   ;;  %s362_s19 = smov 24  }
   0xd   :  { %30 = dma.hbm_to_vmem [thread:$0]  %s497_s0, 768, %s25_s16, [#allocation5], %s361_s18, %s361_s18, %s362_s19  }
   0xe   :  { %354 = dma.done.wait [#allocation5], 768  }
   0xf   :  { %355 = vsyncadd [#allocation5], 4294966528  ;;  %v363_v0 = vmov 1   ;;  %v180_v1 = vld [vmem:[%s499_s2] sm:$0xff]  ;;  %v364_v2 = vmov 0   ;;  %v400_v4 = vld [vmem:[#allocation4 + $0x18] sm:$0xff]  ;;  %v97_v29 = vlaneseq }
  0x10   :  { %280 = vset.pattern.permute.xlu0 %v363_v0  ;;  %v398_v3 = vld [vmem:[#allocation4] sm:$0xff]  ;;  %v402_v5 = vld [vmem:[#allocation4 + $0x8] sm:$0xff]  ;;  %v408_v8 = vld [vmem:[#allocation4 + $0x10] sm:$0xff]  ;;  %s366_s25 = smov [#allocation8]  }
  0x11   :  { %183 = vperm.xlu0 %280, %v180_v1   ;;  %v404_v6 = vld [vmem:[#allocation4 + $0x20] sm:$0xff]  ;;  %v126_v7 = vsub.f32 %v398_v3, %v400_v4  ;;  %v410_v9 = vld [vmem:[#allocation4 + $0x28] sm:$0xff]  ;;  %v98_v35 = vand.u32 127, %v97_v29  ;;  %v123_v54 = vmax.f32 %v398_v3, %v400_v4  ;;  %s252_s26 = sshll.u32 %s366_s25, 4  ;;  %s253_s26 = int_to_ptr.vmem [resolvable:$true] %s252_s26 }
  0x12   :  { %v127_v10 = vsub.f32 %v402_v5, %v404_v6  ;;  %v128_v11 = vsub.f32 %v408_v8, %v410_v9  ;;  %v91_v40 = vld [vmem:[%s498_s1] sm:$0x3f]  ;;  %v124_v55 = vmax.f32 %v402_v5, %v404_v6  ;;  %v125_v60 = vmax.f32 %v408_v8, %v410_v9  ;;  %s365_s1 = smov [#allocation7]  }
  0x13   :  { %v129_v12 = vand.u32 2147483647, %v126_v7  ;;  %v100_v46 = vadd.s32 256, %v98_v35  ;;  %v92_v49 = vunpack.c.0.s8 %v91_v40  ;;  %v94_v50 = vunpack.c.2.s8 %v91_v40  ;;  %s242_s24 = sshll.u32 %s365_s1, 4  ;;  %s243_s24 = int_to_ptr.vmem [resolvable:$true] %s242_s24 }
  0x14   :  { %v130_v13 = vand.u32 2147483647, %v127_v10  ;;  %v131_v14 = vand.u32 2147483647, %v128_v11  ;;  %v93_v53 = vunpack.c.1.s8 %v91_v40  ;;  %s314_s27 = scalar_lea.vmem %s243_s24, 128  ;;  %p319_p6 = scmp.lt.s32.totalorder %s243_s24, %s243_s24 }
  0x15   :  { %281 = vset.pattern.permute.xlu0 %v364_v2  ;;  %v132_v15 = vsub.f32 0.0, %v129_v12  ;;  %vm110_vm3 = vcmp.eq.s32.totalorder %v94_v50, 0  ;;  %vm435_vm4 = vcmp.eq.s32.totalorder %v92_v49, 0  ;;  %vm107_vm6 = vcmp.lt.s32.totalorder %v100_v46, 383  ;;  %p315_p5 = scmp.ne.s32.totalorder %s243_s24, %s314_s27  ;;  %p320_p7 = scmp.lt.s32.totalorder %s314_s27, %s314_s27 }
  0x16   :  { %190 = vperm.xlu0 %281, %v180_v1   ;;  %v133_v16 = vsub.f32 0.0, %v130_v13  ;;  %v134_v17 = vsub.f32 0.0, %v131_v14  ;;  %vm439_vm5 = vcmp.eq.s32.totalorder %v93_v53, 0  ;;  %vm446_vm7 = vmand %vm107_vm6, %vm110_vm3  ;;  %v171_v1 = vsel %vm435_vm4, %v398_v3, %v400_v4 }
  0x17   :  { %v135_v18 = vmul.f32 1.442695, %v132_v15  ;;  %v172_v2 = vsel %vm439_vm5, %v402_v5, %v404_v6  ;;  %vm458_vm8 = vcmp.eq.s32.totalorder %v92_v49, 1  ;;  %vm116_vm9 = vcmp.eq.s32.totalorder %v94_v50, 1  ;;  %p321_p8 = por %p320_p7, %p319_p6 }
  0x18   :  { %v137_v19 = vmul.f32 1.442695, %v133_v16  ;;  %v139_v20 = vmul.f32 1.442695, %v134_v17  ;;  %v173_v11 = vsel %vm446_vm7, %v408_v8, %v410_v9  ;;  %vm466_vm10 = vcmp.eq.s32.totalorder %v93_v53, 1  ;;  %vm120_vm11 = vmor %vm435_vm4, %vm458_vm8 }
  0x19   :  { %282 = vpow2.f32 %v135_v18  ;;  %vm121_vm12 = vmor %vm439_vm5, %vm466_vm10  ;;  %p322_p9 = pnand %p321_p8, %p315_p5 }
  0x1a   :  { %284 = vpow2.f32 %v137_v19  ;;  %vm119_vm13 = vmand %vm107_vm6, %vm116_vm9 }
  0x1b   :  { %286 = vpow2.f32 %v139_v20  ;;  %vm122_vm14 = vmor %vm446_vm7, %vm119_vm13 }
  0x26   :  { %v283_v21 = vpop.eup %282 }
  0x27   :  { %v285_v22 = vpop.eup %284  ;;  %v141_v24 = vadd.f32 1.0, %v283_v21  ;;  %v144_v27 = vmul.f32 -0.5, %v283_v21  ;;  %v147_v36 = vand.u32 2147483647, %v283_v21 }
  0x28   :  { %v287_v23 = vpop.eup %286  ;;  %v150_v25 = vadd.f32 1.0, %v285_v22  ;;  %v153_v28 = vmul.f32 -0.5, %v285_v22  ;;  %v156_v37 = vand.u32 2147483647, %v285_v22 }
  0x29   :  { %v159_v26 = vadd.f32 1.0, %v287_v23  ;;  %288 = vlog2.f32 %v141_v24  ;;  %v162_v30 = vmul.f32 -0.5, %v287_v23  ;;  %v145_v32 = vadd.f32 1.0, %v144_v27 }
  0x2a   :  { %290 = vlog2.f32 %v150_v25  ;;  %v154_v33 = vadd.f32 1.0, %v153_v28  ;;  %v165_v41 = vand.u32 2147483647, %v287_v23  ;;  %vm419_vm0 = vcmp.lt.f32.partialorder %v147_v36, 0.0004427343 }
  0x2b   :  { %292 = vlog2.f32 %v159_v26  ;;  %v163_v38 = vadd.f32 1.0, %v162_v30  ;;  %v146_v43 = vmul.f32 %v283_v21, %v145_v32  ;;  %vm423_vm1 = vcmp.lt.f32.partialorder %v156_v37, 0.0004427343 }
  0x2c   :  { %v155_v45 = vmul.f32 %v285_v22, %v154_v33  ;;  %vm166_vm2 = vcmp.lt.f32.partialorder %v165_v41, 0.0004427343 }
  0x2d   :  { %v164_v52 = vmul.f32 %v287_v23, %v163_v38 }
  0x36   :  { %v289_v31 = vpop.eup %288 }
  0x37   :  { %v291_v34 = vpop.eup %290  ;;  %v143_v42 = vmul.f32 0.6931472, %v289_v31 }
  0x38   :  { %v293_v39 = vpop.eup %292  ;;  %v152_v44 = vmul.f32 0.6931472, %v291_v34 }
  0x39   :  { %v161_v51 = vmul.f32 0.6931472, %v293_v39  ;;  %v149_v56 = vsel %vm419_vm0, %v146_v43, %v143_v42 }
  0x3a   :  { %v158_v57 = vsel %vm423_vm1, %v155_v45, %v152_v44  ;;  %v168_v63 = vadd.f32 %v149_v56, %v123_v54 }
  0x3b   :  { %v167_v61 = vsel %vm166_vm2, %v164_v52, %v161_v51  ;;  %v169_v0 = vadd.f32 %v158_v57, %v124_v55 }
  0x3c   :  { %v170_v7 = vadd.f32 %v167_v61, %v125_v60  ;;  %v174_v3 = vsub.f32 %v168_v63, %v171_v1 }
  0x3d   :  { %v175_v4 = vsub.f32 %v169_v0, %v172_v2 }
  0x3e   :  { %v176_v5 = vsub.f32 %v170_v7, %v173_v11  ;;  %v177_v6 = vsel %vm120_vm11, %v174_v3, 0.0 }
  0x3f   :  { %v178_v8 = vsel %vm121_vm12, %v175_v4, 0.0 }
  0x40   :  { %v179_v20 = vsel %vm122_vm14, %v176_v5, 0.0 }
  0x8c   :  { %v184_v12 = vpop.permute.xlu0 %183 }
  0x8d   :  { %v186_v9 = vsel %vm458_vm8, %v184_v12, 0.0  ;;  %v187_v14 = vsel %vm466_vm10, %v184_v12, 0.0  ;;  %v188_v15 = vsel %vm119_vm13, %v184_v12, 0.0 }
  0x91   :  { %v191_v16 = vpop.permute.xlu0 %190 }
  0x92   :  { %v193_v17 = vsel %vm435_vm4, %v191_v16, %v186_v9  ;;  %v194_v18 = vsel %vm439_vm5, %v191_v16, %v187_v14  ;;  %v195_v19 = vsel %vm446_vm7, %v191_v16, %v188_v15 }
  0x93   :  { %v199_v21 = vmul.f32 %v193_v17, %v177_v6  ;;  %v200_v22 = vmul.f32 %v194_v18, %v178_v8  ;;  %v201_v23 = vmul.f32 %v195_v19, %v179_v20  ;;  %v230_v25 = vadd.f32 %v194_v18, %v193_v17 }
  0x95   :  { %v223_v24 = vadd.f32 %v200_v22, %v199_v21  ;;  %v231_v27 = vadd.f32 %v230_v25, %v195_v19 }
  0x97   :  { %v224_v26 = vadd.f32 %v223_v24, %v201_v23 }
  0x99   :  { %225 = vadd.xlane.f32.xlu1 %v224_v26 }
  0x9d   :  { %232 = vadd.xlane.f32.xlu1 %v231_v27 }
 0x122   :  { %v226_v28 = vpop.xlane.xlu1 %225 }
 0x123   :  { %234 = vst [vmem:[#allocation7] sm:$0xff] %v226_v28 }
 0x124   :  { %325 = shalt.err (!%p322_p9)
}
 0x125   :  { %245 = dma.vmem_to_hbm [thread:$0]  %s243_s24, 128, %s500_s3, [#allocation6]  }
 0x126   :  { %v233_v29 = vpop.xlane.xlu1 %232  ;;  %s334_s30 = scalar_lea.vmem %s253_s26, 128  ;;  %p339_p11 = scmp.lt.s32.totalorder %s253_s26, %s253_s26 }
 0x127   :  { %235 = vst [vmem:[#allocation8] sm:$0xff] %v233_v29  ;;  %p335_p10 = scmp.ne.s32.totalorder %s253_s26, %s334_s30  ;;  %p340_p12 = scmp.lt.s32.totalorder %s334_s30, %s334_s30 }
 0x129   :  { %p341_p13 = por %p340_p12, %p339_p11 }
 0x12b   :  { %p342_p0 = pnand %p341_p13, %p335_p10 }
 0x12d   :  { %345 = shalt.err (!%p342_p0)
}
 0x12e   :  { %255 = dma.vmem_to_hbm [thread:$0]  %s253_s26, 128, %s501_s4, [#allocation9]  }
 0x12f   :  { %356 = dma.done.wait [#allocation6], 128  }
 0x130   :  { %357 = vsyncadd [#allocation6], 4294967168 }
 0x131   :  { %358 = dma.done.wait [#allocation9], 128  }
 0x132   :  { %359 = vsyncadd [#allocation9], 4294967168 }
 0x133   :  { %262 = vsyncpa [#allocation5], 1 }
 0x134   :  { %263 = vsyncpa [#allocation6], 1 }
 0x135   :  { %264 = vsyncpa [#allocation9], 1 }

</bundles_post_ra>
